<compile_context>
chip_gen: v6e
topology: v6e:2x2x1
jax: 0.10.0
libtpu: 0.0.40
codegen_flags: <defaults>
</compile_context>

<pallas_src>
import math

import jax
import jax.numpy as jnp
from jax.experimental import pallas as pl
from jax.experimental.pallas import tpu as pltpu


def _time_embedding_kernel(t_ref, packed_ref, w2_ref, o_ref):
    # t_ref:      (TB, 1)   f32 batch-tile of timesteps
    # packed_ref: (3,  D)   rows = [w1, b1, b2] (feature dim padded to D)
    # w2_ref:     (D,  D)   second linear weight in "x @ W" layout, padded
    # o_ref:      (TB, D)   output tile
    t = t_ref[...]                      # (TB, 1)
    w1 = packed_ref[0:1, :]             # (1, D)
    b1 = packed_ref[1:2, :]             # (1, D)
    b2 = packed_ref[2:3, :]             # (1, D)

    # linear1 as a rank-1 outer product on the VPU (no K=1 MXU matmul).
    h = t * w1 + b1                     # (TB, D)

    # Exact GELU (PyTorch nn.GELU() default): 0.5*x*(1+erf(x/sqrt(2))).
    h = 0.5 * h * (1.0 + jax.lax.erf(h * (1.0 / math.sqrt(2.0))))

    # linear2 on the MXU, true-f32 accumulation + HIGHEST precision for parity.
    out = jnp.dot(h, w2_ref[...],
                  preferred_element_type=jnp.float32,
                  precision=jax.lax.Precision.HIGHEST) + b2
    o_ref[...] = out.astype(o_ref.dtype)


def pack_time_embedding_params(w1, b1, w2, b2):
    """One-time weight packing/padding. Call OUTSIDE the hot path.

    w1: (1, dim), b1: (dim,), w2: (dim, dim), b2: (dim,) -- all in "x @ W"
    (pre-transposed) layout, matching nn.Linear math.
    Returns (packed (3, D), w2_p (D, D), dim) with D = round_up(dim, 128).
    Zero-padded rows/cols contribute nothing to the valid output columns.
    """
    dim = w1.shape[1]
    D = ((dim + 127) // 128) * 128
    pad = D - dim
    w1_p = jnp.pad(w1.astype(jnp.float32), ((0, 0), (0, pad)))          # (1, D)
    b1_p = jnp.pad(b1.astype(jnp.float32), ((0, pad),)).reshape(1, D)   # (1, D)
    b2_p = jnp.pad(b2.astype(jnp.float32), ((0, pad),)).reshape(1, D)   # (1, D)
    packed = jnp.concatenate([w1_p, b1_p, b2_p], axis=0)                # (3, D)
    w2_p = jnp.pad(w2.astype(jnp.float32), ((0, pad), (0, pad)))        # (D, D)
    return packed, w2_p, dim


def _vmem_capacity_bytes():
    try:
        return int(pltpu.get_tpu_info().vmem_capacity_bytes)
    except Exception:
        return 64 << 20   # conservative fallback (v7x per-TC size)


def _choose_batch_tile(b8, block_b, D, vmem_cap):
    """Sublane-aligned, VMEM-budgeted, equalized batch tile; >=2 grid steps
    whenever the batch allows it (so v7x megacore gets both cores busy)."""
    # per-row VMEM: double-buffered output + ~2 f32 intermediates + 2x t
    per_row = 4 * (2 * D + 2 * D + 2)
    weight_bytes = 4 * (3 * D + D * D)              # single-buffered residents
    budget = max(int(0.6 * vmem_cap) - weight_bytes, 64 << 10)
    tb_cap = max(8, (budget // per_row) // 8 * 8)
    block_b = max(8, min(block_b, tb_cap))
    want_tiles = max(2, -(-b8 // block_b))          # >= 2 grid steps ...
    want_tiles = min(want_tiles, max(1, b8 // 8))   # ... if batch is big enough
    TB = 8 * (-(-b8 // (8 * want_tiles)))           # equalized, 8-row aligned
    num_tiles = -(-b8 // TB)
    return TB, num_tiles


def time_embedding(t, packed, w2_p, dim, *, block_b=2048):
    """TimeEmbedding forward (hot path).

    t:      (B, 1) f32 timesteps.
    packed: (3, D) packed [w1, b1, b2] from pack_time_embedding_params.
    w2_p:   (D, D) padded second-linear weight ("x @ W" layout).
    Returns (B, dim) f32.
    """
    B = t.shape[0]
    D = packed.shape[1]

    b8 = ((B + 7) // 8) * 8
    vmem_cap = _vmem_capacity_bytes()
    TB, num_tiles = _choose_batch_tile(b8, block_b, D, vmem_cap)
    B_pad = num_tiles * TB
    t_p = jnp.pad(t.astype(jnp.float32), ((0, B_pad - B), (0, 0)))      # (B_pad, 1)

    # Actual buffer sum (weights single-buffered; 2*D*D headroom also covers
    # the double-buffered fallback), capped at the per-generation capacity.
    est = 4 * (2 * TB + 3 * D + 2 * D * D + 4 * TB * D)
    vmem_limit = int(min(max(est + (2 << 20), 4 << 20), int(0.85 * vmem_cap)))

    def build(single_buffer_weights):
        if single_buffer_weights:
            w_specs = [
                pl.BlockSpec((3, D), lambda i: (0, 0), pipeline_mode=pl.Buffered(1)),
                pl.BlockSpec((D, D), lambda i: (0, 0), pipeline_mode=pl.Buffered(1)),
            ]
        else:
            w_specs = [
                pl.BlockSpec((3, D), lambda i: (0, 0)),
                pl.BlockSpec((D, D), lambda i: (0, 0)),
            ]
        return pl.pallas_call(
            _time_embedding_kernel,
            out_shape=jax.ShapeDtypeStruct((B_pad, D), jnp.float32),
            grid=(num_tiles,),
            in_specs=[pl.BlockSpec((TB, 1), lambda i: (i, 0))] + w_specs,
            out_specs=pl.BlockSpec((TB, D), lambda i: (i, 0)),
            compiler_params=pltpu.CompilerParams(
                dimension_semantics=("parallel",),
                vmem_limit_bytes=vmem_limit,
            ),
        )

    try:
        out_p = build(True)(t_p, packed, w2_p)
    except Exception:
        # Fallback if Buffered(1) resident blocks are not supported by this
        # jax version: default double-buffering (only costs extra weight VMEM).
        out_p = build(False)(t_p, packed, w2_p)

    return out_p[:B, :dim]


def _ref_forward(t, w1, b1, w2, b2):
    h = t * w1 + b1[None, :]
    h = 0.5 * h * (1.0 + jax.lax.erf(h / math.sqrt(2.0)))
    return jnp.dot(h, w2, precision=jax.lax.Precision.HIGHEST) + b2[None, :]


if __name__ == "__main__":
    dim = 32
    batch = 8

    key = jax.random.PRNGKey(0)
    k_t, k_w1, k_b1, k_w2, k_b2 = jax.random.split(key, 5)

    # Deterministic params (shapes from nn.Linear(1,dim), nn.Linear(dim,dim)),
    # stored pre-transposed for "x @ W" use.
    t = jax.random.normal(k_t, (batch, 1), dtype=jnp.float32)
    w1 = jax.random.normal(k_w1, (1, dim), dtype=jnp.float32)
    b1 = jax.random.normal(k_b1, (dim,), dtype=jnp.float32) * 0.1
    w2 = jax.random.normal(k_w2, (dim, dim), dtype=jnp.float32) * (1.0 / math.sqrt(dim))
    b2 = jax.random.normal(k_b2, (dim,), dtype=jnp.float32) * 0.1

    # One-time weight packing, kept out of the hot path.
    packed, w2_p, dim_out = pack_time_embedding_params(w1, b1, w2, b2)
    packed, w2_p = jax.block_until_ready((packed, w2_p))

    out = time_embedding(t, packed, w2_p, dim_out)
    out = jax.block_until_ready(out)

    ref = _ref_forward(t, w1, b1, w2, b2)
    assert out.shape == (batch, dim)
    assert jnp.allclose(out, ref, atol=1e-5, rtol=1e-5), "mismatch vs reference"

    print("KERNEL_OK")
</pallas_src>

<mosaic_0001>
module attributes {stable_mosaic.version = 11 : i64} {
  func.func @_time_embedding_kernel(%arg0: i32, %arg1: memref<8x1xf32, #tpu.memory_space<vmem>>, %arg2: memref<3x128xf32, #tpu.memory_space<vmem>>, %arg3: memref<128x128xf32, #tpu.memory_space<vmem>>, %arg4: memref<8x128xf32, #tpu.memory_space<vmem>>) attributes {dimension_semantics = [#tpu.dimension_semantics<parallel>], iteration_bounds = array<i64: 1>, scalar_prefetch = 0 : i64, scratch_operands = 0 : i64, tpu.core_type = #tpu.core_type<tc>, window_params = [{transform_indices = @transform_0, window_bounds = array<i64: 8, 1>}, {pipeline_mode = #tpu.pipeline_mode<synchronous>, transform_indices = @transform_1, window_bounds = array<i64: 3, 128>}, {pipeline_mode = #tpu.pipeline_mode<synchronous>, transform_indices = @transform_2, window_bounds = array<i64: 128, 128>}, {transform_indices = @transform_3, window_bounds = array<i64: 8, 128>}]} {
    %c0 = arith.constant 0 : index
    %c0_0 = arith.constant 0 : index
    %0 = vector.load %arg1[%c0, %c0_0] : memref<8x1xf32, #tpu.memory_space<vmem>>, vector<8x1xf32>
    %c0_1 = arith.constant 0 : index
    %c0_2 = arith.constant 0 : index
    %1 = vector.load %arg2[%c0_1, %c0_2] : memref<3x128xf32, #tpu.memory_space<vmem>>, vector<1x128xf32>
    %c1 = arith.constant 1 : index
    %c0_3 = arith.constant 0 : index
    %2 = vector.load %arg2[%c1, %c0_3] : memref<3x128xf32, #tpu.memory_space<vmem>>, vector<1x128xf32>
    %c2 = arith.constant 2 : index
    %c0_4 = arith.constant 0 : index
    %3 = vector.load %arg2[%c2, %c0_4] : memref<3x128xf32, #tpu.memory_space<vmem>>, vector<1x128xf32>
    %4 = vector.broadcast %0 : vector<8x1xf32> to vector<8x128xf32>
    %5 = vector.broadcast %1 : vector<1x128xf32> to vector<8x128xf32>
    %6 = arith.mulf %4, %5 : vector<8x128xf32>
    %7 = vector.broadcast %2 : vector<1x128xf32> to vector<8x128xf32>
    %8 = arith.addf %6, %7 : vector<8x128xf32>
    %cst = arith.constant 5.000000e-01 : f32
    %9 = vector.broadcast %cst : f32 to vector<8x128xf32>
    %10 = arith.mulf %9, %8 : vector<8x128xf32>
    %cst_5 = arith.constant 0.707106769 : f32
    %11 = vector.broadcast %cst_5 : f32 to vector<8x128xf32>
    %12 = arith.mulf %8, %11 : vector<8x128xf32>
    %13 = math.erf %12 : vector<8x128xf32>
    %cst_6 = arith.constant 1.000000e+00 : f32
    %14 = vector.broadcast %cst_6 : f32 to vector<8x128xf32>
    %15 = arith.addf %14, %13 : vector<8x128xf32>
    %16 = arith.mulf %10, %15 : vector<8x128xf32>
    %c0_7 = arith.constant 0 : index
    %c0_8 = arith.constant 0 : index
    %17 = vector.load %arg3[%c0_7, %c0_8] : memref<128x128xf32, #tpu.memory_space<vmem>>, vector<128x128xf32>
    %cst_9 = arith.constant dense<0.000000e+00> : vector<8x128xf32>
    %18 = tpu.matmul %16, %17, %cst_9 {dimension_numbers = #tpu.dot_dimension_numbers<[1], [0], [0], [1], [0, 0, 1, 1], [], []>, precision = #tpu.contract_precision<fp32>} : vector<8x128xf32>, vector<128x128xf32>, vector<8x128xf32> -> vector<8x128xf32>
    %19 = vector.broadcast %3 : vector<1x128xf32> to vector<8x128xf32>
    %20 = arith.addf %18, %19 : vector<8x128xf32>
    %c0_10 = arith.constant 0 : index
    %c0_11 = arith.constant 0 : index
    %21 = vector.load %arg4[%c0_10, %c0_11] : memref<8x128xf32, #tpu.memory_space<vmem>>, vector<8x128xf32>
    tpu.vector_store %arg4[%c0_10, %c0_11], %20 {strides = array<i32>} : memref<8x128xf32, #tpu.memory_space<vmem>>, vector<8x128xf32>,
    return
  }
  func.func @transform_0(%arg0: i32) -> (i32, i32) {
    %c0_i32 = arith.constant 0 : i32
    %c0_i32_0 = arith.constant 0 : i32
    return %arg0, %c0_i32 : i32, i32
  }
  func.func @transform_1(%arg0: i32) -> (i32, i32) {
    %c0_i32 = arith.constant 0 : i32
    %c0_i32_0 = arith.constant 0 : i32
    %c0_i32_1 = arith.constant 0 : i32
    return %c0_i32, %c0_i32_0 : i32, i32
  }
  func.func @transform_2(%arg0: i32) -> (i32, i32) {
    %c0_i32 = arith.constant 0 : i32
    %c0_i32_0 = arith.constant 0 : i32
    %c0_i32_1 = arith.constant 0 : i32
    return %c0_i32, %c0_i32_0 : i32, i32
  }
  func.func @transform_3(%arg0: i32) -> (i32, i32) {
    %c0_i32 = arith.constant 0 : i32
    %c0_i32_0 = arith.constant 0 : i32
    return %arg0, %c0_i32 : i32, i32
  }
}

module attributes {stable_mosaic.version = 11 : i64} {
  func.func @_time_embedding_kernel(%arg0: i32, %arg1: memref<8x1xf32, #tpu.memory_space<vmem>>, %arg2: memref<3x128xf32, #tpu.memory_space<vmem>>, %arg3: memref<128x128xf32, #tpu.memory_space<vmem>>, %arg4: memref<8x128xf32, #tpu.memory_space<vmem>>) attributes {dimension_semantics = [#tpu.dimension_semantics<parallel>], iteration_bounds = array<i64: 1>, scalar_prefetch = 0 : i64, scratch_operands = 0 : i64, tpu.core_type = #tpu.core_type<tc>, window_params = [{transform_indices = @transform_0, window_bounds = array<i64: 8, 1>}, {pipeline_mode = #tpu.pipeline_mode<synchronous>, transform_indices = @transform_1, window_bounds = array<i64: 3, 128>}, {pipeline_mode = #tpu.pipeline_mode<synchronous>, transform_indices = @transform_2, window_bounds = array<i64: 128, 128>}, {transform_indices = @transform_3, window_bounds = array<i64: 8, 128>}]} {
    %c0 = arith.constant 0 : index
    %c0_0 = arith.constant 0 : index
    %0 = vector.load %arg1[%c0, %c0_0] : memref<8x1xf32, #tpu.memory_space<vmem>>, vector<8x1xf32>
    %c0_1 = arith.constant 0 : index
    %c0_2 = arith.constant 0 : index
    %1 = vector.load %arg2[%c0_1, %c0_2] : memref<3x128xf32, #tpu.memory_space<vmem>>, vector<1x128xf32>
    %c1 = arith.constant 1 : index
    %c0_3 = arith.constant 0 : index
    %2 = vector.load %arg2[%c1, %c0_3] : memref<3x128xf32, #tpu.memory_space<vmem>>, vector<1x128xf32>
    %c2 = arith.constant 2 : index
    %c0_4 = arith.constant 0 : index
    %3 = vector.load %arg2[%c2, %c0_4] : memref<3x128xf32, #tpu.memory_space<vmem>>, vector<1x128xf32>
    %4 = vector.broadcast %0 : vector<8x1xf32> to vector<8x128xf32>
    %5 = vector.broadcast %1 : vector<1x128xf32> to vector<8x128xf32>
    %6 = arith.mulf %4, %5 : vector<8x128xf32>
    %7 = vector.broadcast %2 : vector<1x128xf32> to vector<8x128xf32>
    %8 = arith.addf %6, %7 : vector<8x128xf32>
    %cst = arith.constant 5.000000e-01 : f32
    %9 = vector.broadcast %cst : f32 to vector<8x128xf32>
    %10 = arith.mulf %9, %8 : vector<8x128xf32>
    %cst_5 = arith.constant 0.707106769 : f32
    %11 = vector.broadcast %cst_5 : f32 to vector<8x128xf32>
    %12 = arith.mulf %8, %11 : vector<8x128xf32>
    %13 = math.erf %12 : vector<8x128xf32>
    %cst_6 = arith.constant 1.000000e+00 : f32
    %14 = vector.broadcast %cst_6 : f32 to vector<8x128xf32>
    %15 = arith.addf %14, %13 : vector<8x128xf32>
    %16 = arith.mulf %10, %15 : vector<8x128xf32>
    %c0_7 = arith.constant 0 : index
    %c0_8 = arith.constant 0 : index
    %17 = vector.load %arg3[%c0_7, %c0_8] : memref<128x128xf32, #tpu.memory_space<vmem>>, vector<128x128xf32>
    %cst_9 = arith.constant dense<0.000000e+00> : vector<8x128xf32>
    %18 = tpu.matmul %16, %17, %cst_9 {dimension_numbers = #tpu.dot_dimension_numbers<[1], [0], [0], [1], [0, 0, 1, 1], [], []>, precision = #tpu.contract_precision<fp32>} : vector<8x128xf32>, vector<128x128xf32>, vector<8x128xf32> -> vector<8x128xf32>
    %19 = vector.broadcast %3 : vector<1x128xf32> to vector<8x128xf32>
    %20 = arith.addf %18, %19 : vector<8x128xf32>
    %c0_10 = arith.constant 0 : index
    %c0_11 = arith.constant 0 : index
    %21 = vector.load %arg4[%c0_10, %c0_11] : memref<8x128xf32, #tpu.memory_space<vmem>>, vector<8x128xf32>
    tpu.vector_store %arg4[%c0_10, %c0_11], %20 {strides = array<i32>} : memref<8x128xf32, #tpu.memory_space<vmem>>, vector<8x128xf32>,
    return
  }
  func.func @transform_0(%arg0: i32) -> (i32, i32) {
    %c0_i32 = arith.constant 0 : i32
    %c0_i32_0 = arith.constant 0 : i32
    return %arg0, %c0_i32 : i32, i32
  }
  func.func @transform_1(%arg0: i32) -> (i32, i32) {
    %c0_i32 = arith.constant 0 : i32
    %c0_i32_0 = arith.constant 0 : i32
    %c0_i32_1 = arith.constant 0 : i32
    return %c0_i32, %c0_i32_0 : i32, i32
  }
  func.func @transform_2(%arg0: i32) -> (i32, i32) {
    %c0_i32 = arith.constant 0 : i32
    %c0_i32_0 = arith.constant 0 : i32
    %c0_i32_1 = arith.constant 0 : i32
    return %c0_i32, %c0_i32_0 : i32, i32
  }
  func.func @transform_3(%arg0: i32) -> (i32, i32) {
    %c0_i32 = arith.constant 0 : i32
    %c0_i32_0 = arith.constant 0 : i32
    return %arg0, %c0_i32 : i32, i32
  }
}

</mosaic_0001>

<bundles_post_ra>
// kernel: tpu_custom_call.1
= control target key start
LH: loop header
LB: loop body
LE: loop exit
PB: predicated region body
PF: predicated region fallthrough
CT: control target
= control target key end

     0   :  { %8 = vsyncpa [#allocation3], 0  ;;  %s1503_s0 = inlined_call_operand.vmem [shape: f32[8,1], index: 0, kind: input, shape index: {}]   ;;  %s1504_s1 = inlined_call_operand.vmem [shape: f32[3,128], index: 1, kind: input, shape index: {}]   ;;  %s1505_s2 = inlined_call_operand.hbm [shape: f32[128,128], index: 2, kind: input, shape index: {}]   ;;  %s1506_s3 = inlined_call_operand.hbm [shape: f32[8,128], index: 3, kind: output, shape index: {}]  }
   0x1   :  { %9 = vsyncpa [#allocation4], 0  ;;  %s1099_s12 = smov [#allocation2]  }
   0x2   :  { %s19_s13 = sshll.u32 %s1099_s12, 4  ;;  %s20_s13 = int_to_ptr.vmem [resolvable:$true] %s19_s13 }
   0x3   :  { %s1063_s14 = scalar_lea.vmem %s20_s13, 2048  ;;  %p1068_p1 = scmp.lt.s32.totalorder %s20_s13, %s20_s13 }
   0x4   :  { %p1064_p0 = scmp.ne.s32.totalorder %s20_s13, %s1063_s14  ;;  %p1069_p2 = scmp.lt.s32.totalorder %s1063_s14, %s1063_s14 }
   0x6   :  { %p1070_p3 = por %p1069_p2, %p1068_p1 }
   0x8   :  { %p1071_p4 = pnand %p1070_p3, %p1064_p0 }
   0xa   :  { %1074 = shalt.err (!%p1071_p4)
}
   0xb   :  { %s1100_s15 = smov 128   ;;  %s1101_s16 = smov 8  }
   0xc   :  { %25 = dma.hbm_to_vmem [thread:$0]  %s1505_s2, 2048, %s20_s13, [#allocation3], %s1100_s15, %s1100_s15, %s1101_s16  }
   0xd   :  { %1095 = dma.done.wait [#allocation3], 2048  }
   0xe   :  { %1096 = vsyncadd [#allocation3], 4294965248  ;;  %v1102_v0 = vmov 0   ;;  %v1103_v1 = vmov 0.0   ;;  %v29_v2 = vld [vmem:[%s1503_s0] sm:$0xff]  ;;  %v68_v3 = vld [vmem:[#allocation2 + $0x78] sm:$0xff] }
   0xf   :  { %1052 = vset.pattern.permute.xlu0 %v1102_v0  ;;  %870 = vmatprep.subr.mxu1 %v1103_v1  ;;  %v67_v4 = vld [vmem:[#allocation2 + $0x70] sm:$0xff]  ;;  %v1134_v5 = vand.u32 4294901760, %v68_v3  ;;  %v66_v7 = vld [vmem:[#allocation2 + $0x68] sm:$0xff]  ;;  %v65_v8 = vld [vmem:[#allocation2 + $0x60] sm:$0xff]  ;;  %vm1104_vm0 = vmmov 0   ;;  %s1105_s25 = smov [#allocation5]  }
  0x10   :  { %835 = vmatprep.subr.mxu0 %v1103_v1  ;;  %35 = vperm.xlu0 %1052, %v29_v2   ;;  %v1136_v6 = vand.u32 4294901760, %v67_v4  ;;  %v1138_v9 = vand.u32 4294901760, %v66_v7  ;;  %v1140_v10 = vand.u32 4294901760, %v65_v8  ;;  %v64_v11 = vld [vmem:[#allocation2 + $0x58] sm:$0xff]  ;;  %v63_v12 = vld [vmem:[#allocation2 + $0x50] sm:$0xff]  ;;  %v62_v17 = vld [vmem:[#allocation2 + $0x48] sm:$0xff] }
  0x11   :  { %v1143_v13 = vsub.f32 %v68_v3, %v1134_v5  ;;  %836 = vmatpush3.msra.mxu0 %v1134_v5  ;;  %v1149_v15 = vand.u32 4294901760, %v64_v11  ;;  %v1151_v16 = vand.u32 4294901760, %v63_v12  ;;  %v61_v18 = vld [vmem:[#allocation2 + $0x40] sm:$0xff]  ;;  %v1160_v21 = vand.u32 4294901760, %v62_v17  ;;  %v60_v36 = vld [vmem:[#allocation2 + $0x38] sm:$0xff]  ;;  %v59_v37 = vld [vmem:[#allocation2 + $0x30] sm:$0xff]  ;;  %902 = vmatprep.mubr.msk.f32.mxu1 %vm1104_vm0, %v1103_v1 }
  0x12   :  { %v1146_v14 = vsub.f32 %v67_v4, %v1136_v6  ;;  %v1154_v19 = vsub.f32 %v66_v7, %v1138_v9  ;;  %v1157_v20 = vsub.f32 %v65_v8, %v1140_v10  ;;  %837 = vmatprep.subr.mxu0 %v1103_v1  ;;  %v1162_v22 = vand.u32 4294901760, %v61_v18  ;;  %v58_v41 = vld [vmem:[#allocation2 + $0x28] sm:$0xff]  ;;  %v57_v43 = vld [vmem:[#allocation2 + $0x20] sm:$0xff]  ;;  %v56_v51 = vld [vmem:[#allocation2 + $0x18] sm:$0xff]  ;;  %867 = vmatprep.mubr.msk.f32.mxu0 %vm1104_vm0, %v1103_v1  ;;  %s721_s26 = sshll.u32 %s1105_s25, 4  ;;  %s722_s26 = int_to_ptr.vmem [resolvable:$true] %s721_s26 }
  0x13   :  { %v167_v23 = vand.u32 4294901760, %v1143_v13  ;;  %v1167_v25 = vsub.f32 %v64_v11, %v1149_v15  ;;  %838 = vmatpush3.msra.mxu0 %v1136_v6  ;;  %v1171_v26 = vsub.f32 %v63_v12, %v1151_v16  ;;  %v1177_v29 = vsub.f32 %v62_v17, %v1160_v21  ;;  %v55_v57 = vld [vmem:[#allocation2 + $0x10] sm:$0xff]  ;;  %v54_v63 = vld [vmem:[#allocation2 + $0x8] sm:$0xff]  ;;  %v53_v8 = vld [vmem:[#allocation2] sm:$0xff]  ;;  %s1075_s27 = scalar_lea.vmem %s722_s26, 128  ;;  %p1080_p6 = scmp.lt.s32.totalorder %s722_s26, %s722_s26 }
  0x14   :  { %v174_v24 = vand.u32 4294901760, %v1146_v14  ;;  %v181_v27 = vand.u32 4294901760, %v1154_v19  ;;  %v188_v28 = vand.u32 4294901760, %v1157_v20  ;;  %839 = vmatprep.subr.mxu0 %v1103_v1  ;;  %v1193_v35 = vsub.f32 %v61_v18, %v1162_v22  ;;  %p1076_p5 = scmp.ne.s32.totalorder %s722_s26, %s1075_s27  ;;  %p1081_p7 = scmp.lt.s32.totalorder %s1075_s27, %s1075_s27 }
  0x15   :  { %v168_v30 = vsub.f32 %v1143_v13, %v167_v23  ;;  %v195_v32 = vand.u32 4294901760, %v1167_v25  ;;  %840 = vmatpush3.msra.mxu0 %v1138_v9  ;;  %v202_v34 = vand.u32 4294901760, %v1171_v26  ;;  %v209_v42 = vand.u32 4294901760, %v1177_v29 }
  0x16   :  { %v175_v31 = vsub.f32 %v1146_v14, %v174_v24  ;;  %v182_v33 = vsub.f32 %v1154_v19, %v181_v27  ;;  %841 = vmatprep.subr.mxu0 %v1103_v1  ;;  %v189_v40 = vsub.f32 %v1157_v20, %v188_v28  ;;  %v1205_v46 = vand.u32 4294901760, %v60_v36  ;;  %p1082_p8 = por %p1081_p7, %p1080_p6 }
  0x17   :  { %v169_v38 = vand.u32 4294901760, %v168_v30  ;;  %842 = vmatpush3.msra.mxu0 %v1140_v10  ;;  %v196_v45 = vsub.f32 %v1167_v25, %v195_v32  ;;  %v1207_v47 = vand.u32 4294901760, %v59_v37  ;;  %v203_v48 = vsub.f32 %v1171_v26, %v202_v34 }
  0x18   :  { %v176_v39 = vand.u32 4294901760, %v175_v31  ;;  %843 = vmatprep.subr.mxu0 %v1103_v1  ;;  %v183_v44 = vand.u32 4294901760, %v182_v33  ;;  %v216_v49 = vand.u32 4294901760, %v1193_v35  ;;  %v1215_v50 = vand.u32 4294901760, %v58_v41  ;;  %p1083_p9 = pnand %p1082_p8, %p1076_p5 }
  0x19   :  { %871 = vmatpush3.msra.mxu1 %v169_v38  ;;  %844 = vmatpush3.msra.mxu0 %v1149_v15  ;;  %v190_v52 = vand.u32 4294901760, %v189_v40  ;;  %v1218_v53 = vsub.f32 %v60_v36, %v1205_v46  ;;  %v1222_v54 = vsub.f32 %v59_v37, %v1207_v47  ;;  %v1224_v55 = vand.u32 4294901760, %v57_v43 }
  0x1a   :  { %872 = vmatprep.subr.mxu1 %v1103_v1  ;;  %845 = vmatprep.subr.mxu0 %v1103_v1  ;;  %v210_v56 = vsub.f32 %v1177_v29, %v209_v42  ;;  %v197_v58 = vand.u32 4294901760, %v196_v45  ;;  %v1234_v60 = vsub.f32 %v58_v41, %v1215_v50  ;;  %v1236_v61 = vand.u32 4294901760, %v56_v51 }
  0x1b   :  { %873 = vmatpush3.msra.mxu1 %v176_v39  ;;  %846 = vmatpush3.msra.mxu0 %v1151_v16  ;;  %v223_v59 = vand.u32 4294901760, %v1218_v53  ;;  %v217_v62 = vsub.f32 %v1193_v35, %v216_v49  ;;  %v204_v0 = vand.u32 4294901760, %v203_v48  ;;  %v230_v2 = vand.u32 4294901760, %v1222_v54 }
  0x1c   :  { %874 = vmatprep.subr.mxu1 %v1103_v1  ;;  %847 = vmatprep.subr.mxu0 %v1103_v1  ;;  %v1246_v3 = vsub.f32 %v57_v43, %v1224_v55  ;;  %v1248_v4 = vand.u32 4294901760, %v55_v57  ;;  %v211_v7 = vand.u32 4294901760, %v210_v56  ;;  %v237_v12 = vand.u32 4294901760, %v1234_v60 }
  0x1d   :  { %875 = vmatpush3.msra.mxu1 %v183_v44  ;;  %848 = vmatpush3.msra.mxu0 %v1160_v21  ;;  %v224_v11 = vsub.f32 %v1218_v53, %v223_v59  ;;  %v1258_v17 = vsub.f32 %v56_v51, %v1236_v61  ;;  %v1260_v18 = vand.u32 4294901760, %v54_v63  ;;  %v218_v30 = vand.u32 4294901760, %v217_v62 }
  0x1e   :  { %876 = vmatprep.subr.mxu1 %v1103_v1  ;;  %849 = vmatprep.subr.mxu0 %v1103_v1  ;;  %v231_v31 = vsub.f32 %v1222_v54, %v230_v2  ;;  %v244_v33 = vand.u32 4294901760, %v1246_v3  ;;  %v1270_v36 = vsub.f32 %v55_v57, %v1248_v4  ;;  %v1272_v37 = vand.u32 4294901760, %v53_v8 }
  0x1f   :  { %877 = vmatpush3.msra.mxu1 %v190_v52  ;;  %850 = vmatpush3.msra.mxu0 %v1162_v22  ;;  %v225_v38 = vand.u32 4294901760, %v224_v11  ;;  %v238_v39 = vsub.f32 %v1234_v60, %v237_v12  ;;  %v251_v40 = vand.u32 4294901760, %v1258_v17  ;;  %v1282_v41 = vsub.f32 %v54_v63, %v1260_v18 }
  0x20   :  { %878 = vmatprep.subr.mxu1 %v1103_v1  ;;  %851 = vmatprep.subr.mxu0 %v1103_v1  ;;  %v232_v43 = vand.u32 4294901760, %v231_v31  ;;  %v245_v44 = vsub.f32 %v1246_v3, %v244_v33  ;;  %v258_v45 = vand.u32 4294901760, %v1270_v36  ;;  %v1292_v48 = vsub.f32 %v53_v8, %v1272_v37  ;;  %v730_v31 = vld [vmem:[%s1504_s1] ss:$0 sm:$0xff] }
  0x21   :  { %879 = vmatpush3.msra.mxu1 %v197_v58  ;;  %852 = vmatpush3.msra.mxu0 %v1205_v46  ;;  %v239_v51 = vand.u32 4294901760, %v238_v39  ;;  %v252_v52 = vsub.f32 %v1258_v17, %v251_v40  ;;  %v265_v56 = vand.u32 4294901760, %v1282_v41 }
  0x22   :  { %880 = vmatprep.subr.mxu1 %v1103_v1  ;;  %853 = vmatprep.subr.mxu0 %v1103_v1  ;;  %v246_v57 = vand.u32 4294901760, %v245_v44  ;;  %v259_v58 = vsub.f32 %v1270_v36, %v258_v45  ;;  %v272_v62 = vand.u32 4294901760, %v1292_v48 }
  0x23   :  { %881 = vmatpush3.msra.mxu1 %v204_v0  ;;  %854 = vmatpush3.msra.mxu0 %v1207_v47  ;;  %v253_v63 = vand.u32 4294901760, %v252_v52  ;;  %v266_v0 = vsub.f32 %v1282_v41, %v265_v56 }
  0x24   :  { %882 = vmatprep.subr.mxu1 %v1103_v1  ;;  %855 = vmatprep.subr.mxu0 %v1103_v1  ;;  %v273_v8 = vsub.f32 %v1292_v48, %v272_v62 }
  0x25   :  { %883 = vmatpush3.msra.mxu1 %v211_v7  ;;  %856 = vmatpush3.msra.mxu0 %v1215_v50  ;;  %v260_v7 = vand.u32 4294901760, %v259_v58  ;;  %v267_v11 = vand.u32 4294901760, %v266_v0 }
  0x26   :  { %884 = vmatprep.subr.mxu1 %v1103_v1  ;;  %857 = vmatprep.subr.mxu0 %v1103_v1 }
  0x27   :  { %885 = vmatpush3.msra.mxu1 %v218_v30  ;;  %858 = vmatpush3.msra.mxu0 %v1224_v55  ;;  %v274_v30 = vand.u32 4294901760, %v273_v8 }
  0x28   :  { %886 = vmatprep.subr.mxu1 %v1103_v1  ;;  %859 = vmatprep.subr.mxu0 %v1103_v1 }
  0x29   :  { %887 = vmatpush3.msra.mxu1 %v225_v38  ;;  %860 = vmatpush3.msra.mxu0 %v1236_v61  ;;  %v731_v38 = vld [vmem:[%s1504_s1 + $0x1] ss:$0 sm:$0xff] }
  0x2a   :  { %888 = vmatprep.subr.mxu1 %v1103_v1  ;;  %861 = vmatprep.subr.mxu0 %v1103_v1 }
  0x2b   :  { %889 = vmatpush3.msra.mxu1 %v232_v43  ;;  %862 = vmatpush3.msra.mxu0 %v1248_v4 }
  0x2c   :  { %890 = vmatprep.subr.mxu1 %v1103_v1  ;;  %863 = vmatprep.subr.mxu0 %v1103_v1 }
  0x2d   :  { %891 = vmatpush3.msra.mxu1 %v239_v51  ;;  %864 = vmatpush3.msra.mxu0 %v1260_v18 }
  0x2e   :  { %892 = vmatprep.subr.mxu1 %v1103_v1  ;;  %865 = vmatprep.subr.mxu0 %v1103_v1 }
  0x2f   :  { %893 = vmatpush3.msra.mxu1 %v246_v57  ;;  %866 = vmatpush3.msra.mxu0 %v1272_v37 }
  0x30   :  { %894 = vmatprep.subr.mxu1 %v1103_v1  ;;  %905 = vmatprep.subr.mxu0 %v1103_v1 }
  0x31   :  { %895 = vmatpush3.msra.mxu1 %v253_v63 }
  0x32   :  { %896 = vmatprep.subr.mxu1 %v1103_v1 }
  0x33   :  { %897 = vmatpush3.msra.mxu1 %v260_v7 }
  0x34   :  { %898 = vmatprep.subr.mxu1 %v1103_v1 }
  0x35   :  { %899 = vmatpush3.msra.mxu1 %v267_v11 }
  0x36   :  { %900 = vmatprep.subr.mxu1 %v1103_v1 }
  0x37   :  { %901 = vmatpush3.msra.mxu1 %v274_v30 }
  0x38   :  { %940 = vmatprep.subr.mxu1 %v1103_v1 }
  0x8b   :  { %v36_v39 = vpop.permute.xlu0 %35 }
  0x8c   :  { %v42_v43 = vmul.f32 %v730_v31, %v36_v39 }
  0x8e   :  { %v47_v44 = vadd.f32 %v731_v38, %v42_v43 }
  0x90   :  { %v49_v51 = vmul.f32 0.70710677, %v47_v44  ;;  %v48_v57 = vmul.f32 0.5, %v47_v44 }
  0x92   :  { %1053 = verf.f32 %v49_v51 }
  0x9f   :  { %v1054_v52 = vpop.eup %1053 }
  0xa0   :  { %v51_v58 = vadd.f32 1.0, %v1054_v52 }
  0xa2   :  { %v52_v63 = vmul.f32 %v51_v58, %v48_v57 }
  0xa4   :  { %v1336_v0 = vand.u32 4294901760, %v52_v63 }
  0xa6   :  { %903 = vmatmul.mubr.f32.vlgmr.msra.gmra.mxu1 %v1336_v0  ;;  %v1340_v7 = vsub.f32 %v52_v63, %v1336_v0 }
  0xa7   :  { %941 = vmatpush3.msra.mxu1 %v1134_v5  ;;  %972 = vmatprep.mubr.msk.f32.mxu1 %vm1104_vm0, %v1103_v1 }
  0xa8   :  { %942 = vmatprep.subr.mxu1 %v1103_v1  ;;  %v156_v8 = vand.u32 4294901760, %v1340_v7 }
  0xa9   :  { %943 = vmatpush3.msra.mxu1 %v1136_v6 }
  0xaa   :  { %944 = vmatprep.subr.mxu1 %v1103_v1  ;;  %v157_v11 = vsub.f32 %v1340_v7, %v156_v8 }
  0xab   :  { %945 = vmatpush3.msra.mxu1 %v1138_v9 }
  0xac   :  { %946 = vmatprep.subr.mxu1 %v1103_v1  ;;  %v158_v30 = vand.u32 4294901760, %v157_v11 }
  0xad   :  { %947 = vmatpush3.msra.mxu1 %v1140_v10 }
  0xae   :  { %948 = vmatprep.subr.mxu1 %v1103_v1  ;;  %868 = vmatmul.mubr.f32.vlgmr.msra.gmra.mxu0 %v158_v30 }
  0xaf   :  { %906 = vmatpush3.msra.mxu0 %v1143_v13  ;;  %949 = vmatpush3.msra.mxu1 %v1149_v15 }
  0xb0   :  { %907 = vmatprep.subr.mxu0 %v1103_v1  ;;  %950 = vmatprep.subr.mxu1 %v1103_v1 }
  0xb1   :  { %908 = vmatpush3.msra.mxu0 %v1146_v14  ;;  %951 = vmatpush3.msra.mxu1 %v1151_v16 }
  0xb2   :  { %909 = vmatprep.subr.mxu0 %v1103_v1  ;;  %952 = vmatprep.subr.mxu1 %v1103_v1 }
  0xb3   :  { %910 = vmatpush3.msra.mxu0 %v1154_v19  ;;  %953 = vmatpush3.msra.mxu1 %v1160_v21  ;;  %v732_v19 = vld [vmem:[%s1504_s1 + $0x2] ss:$0 sm:$0xff] }
  0xb4   :  { %911 = vmatprep.subr.mxu0 %v1103_v1  ;;  %954 = vmatprep.subr.mxu1 %v1103_v1 }
  0xb5   :  { %912 = vmatpush3.msra.mxu0 %v1157_v20  ;;  %955 = vmatpush3.msra.mxu1 %v1162_v22 }
  0xb6   :  { %913 = vmatprep.subr.mxu0 %v1103_v1  ;;  %956 = vmatprep.subr.mxu1 %v1103_v1 }
  0xb7   :  { %914 = vmatpush3.msra.mxu0 %v1167_v25  ;;  %957 = vmatpush3.msra.mxu1 %v1205_v46 }
  0xb8   :  { %915 = vmatprep.subr.mxu0 %v1103_v1  ;;  %958 = vmatprep.subr.mxu1 %v1103_v1 }
  0xb9   :  { %916 = vmatpush3.msra.mxu0 %v1171_v26  ;;  %959 = vmatpush3.msra.mxu1 %v1207_v47 }
  0xba   :  { %917 = vmatprep.subr.mxu0 %v1103_v1  ;;  %960 = vmatprep.subr.mxu1 %v1103_v1 }
  0xbb   :  { %918 = vmatpush3.msra.mxu0 %v1177_v29  ;;  %961 = vmatpush3.msra.mxu1 %v1215_v50 }
  0xbc   :  { %919 = vmatprep.subr.mxu0 %v1103_v1  ;;  %962 = vmatprep.subr.mxu1 %v1103_v1 }
  0xbd   :  { %920 = vmatpush3.msra.mxu0 %v1193_v35  ;;  %963 = vmatpush3.msra.mxu1 %v1224_v55 }
  0xbe   :  { %921 = vmatprep.subr.mxu0 %v1103_v1  ;;  %964 = vmatprep.subr.mxu1 %v1103_v1 }
  0xbf   :  { %922 = vmatpush3.msra.mxu0 %v1218_v53  ;;  %965 = vmatpush3.msra.mxu1 %v1236_v61 }
  0xc0   :  { %923 = vmatprep.subr.mxu0 %v1103_v1  ;;  %966 = vmatprep.subr.mxu1 %v1103_v1 }
  0xc1   :  { %924 = vmatpush3.msra.mxu0 %v1222_v54  ;;  %967 = vmatpush3.msra.mxu1 %v1248_v4 }
  0xc2   :  { %925 = vmatprep.subr.mxu0 %v1103_v1  ;;  %968 = vmatprep.subr.mxu1 %v1103_v1 }
  0xc3   :  { %926 = vmatpush3.msra.mxu0 %v1234_v60  ;;  %969 = vmatpush3.msra.mxu1 %v1260_v18 }
  0xc4   :  { %927 = vmatprep.subr.mxu0 %v1103_v1  ;;  %970 = vmatprep.subr.mxu1 %v1103_v1 }
  0xc5   :  { %928 = vmatpush3.msra.mxu0 %v1246_v3  ;;  %971 = vmatpush3.msra.mxu1 %v1272_v37 }
  0xc6   :  { %929 = vmatprep.subr.mxu0 %v1103_v1  ;;  %973 = vmatmul.mubr.f32.vlgmr.msra.gmra.mxu1 %v156_v8 }
  0xc7   :  { %1010 = vmatprep.subr.mxu1 %v1103_v1  ;;  %930 = vmatpush3.msra.mxu0 %v1258_v17 }
  0xc8   :  { %1011 = vmatpush3.msra.mxu1 %v1134_v5  ;;  %931 = vmatprep.subr.mxu0 %v1103_v1 }
  0xc9   :  { %1012 = vmatprep.subr.mxu1 %v1103_v1  ;;  %932 = vmatpush3.msra.mxu0 %v1270_v36 }
  0xca   :  { %1013 = vmatpush3.msra.mxu1 %v1136_v6  ;;  %933 = vmatprep.subr.mxu0 %v1103_v1 }
  0xcb   :  { %1014 = vmatprep.subr.mxu1 %v1103_v1  ;;  %934 = vmatpush3.msra.mxu0 %v1282_v41 }
  0xcc   :  { %1015 = vmatpush3.msra.mxu1 %v1138_v9  ;;  %935 = vmatprep.subr.mxu0 %v1103_v1 }
  0xcd   :  { %1016 = vmatprep.subr.mxu1 %v1103_v1  ;;  %936 = vmatpush3.msra.mxu0 %v1292_v48 }
  0xce   :  { %937 = vmatprep.mubr.msk.f32.mxu0 %vm1104_vm0, %v1103_v1  ;;  %1017 = vmatpush3.msra.mxu1 %v1140_v10 }
  0xcf   :  { %938 = vmatmul.mubr.f32.vlgmr.msra.gmra.mxu0 %v1340_v7  ;;  %975 = vmatprep.subr.mxu0 %v1103_v1 }
  0xd0   :  { %1018 = vmatprep.subr.mxu1 %v1103_v1  ;;  %976 = vmatpush3.msra.mxu0 %v167_v23 }
  0xd1   :  { %1019 = vmatpush3.msra.mxu1 %v1149_v15  ;;  %977 = vmatprep.subr.mxu0 %v1103_v1 }
  0xd2   :  { %1020 = vmatprep.subr.mxu1 %v1103_v1  ;;  %978 = vmatpush3.msra.mxu0 %v174_v24 }
  0xd3   :  { %1021 = vmatpush3.msra.mxu1 %v1151_v16  ;;  %979 = vmatprep.subr.mxu0 %v1103_v1 }
  0xd4   :  { %1022 = vmatprep.subr.mxu1 %v1103_v1  ;;  %980 = vmatpush3.msra.mxu0 %v181_v27 }
  0xd5   :  { %1023 = vmatpush3.msra.mxu1 %v1160_v21  ;;  %981 = vmatprep.subr.mxu0 %v1103_v1 }
  0xd6   :  { %1024 = vmatprep.subr.mxu1 %v1103_v1  ;;  %982 = vmatpush3.msra.mxu0 %v188_v28 }
  0xd7   :  { %1025 = vmatpush3.msra.mxu1 %v1162_v22  ;;  %983 = vmatprep.subr.mxu0 %v1103_v1 }
  0xd8   :  { %1026 = vmatprep.subr.mxu1 %v1103_v1  ;;  %984 = vmatpush3.msra.mxu0 %v195_v32 }
  0xd9   :  { %1027 = vmatpush3.msra.mxu1 %v1205_v46  ;;  %985 = vmatprep.subr.mxu0 %v1103_v1 }
  0xda   :  { %1028 = vmatprep.subr.mxu1 %v1103_v1  ;;  %986 = vmatpush3.msra.mxu0 %v202_v34 }
  0xdb   :  { %1029 = vmatpush3.msra.mxu1 %v1207_v47  ;;  %987 = vmatprep.subr.mxu0 %v1103_v1 }
  0xdc   :  { %1030 = vmatprep.subr.mxu1 %v1103_v1  ;;  %988 = vmatpush3.msra.mxu0 %v209_v42 }
  0xdd   :  { %1031 = vmatpush3.msra.mxu1 %v1215_v50  ;;  %989 = vmatprep.subr.mxu0 %v1103_v1 }
  0xde   :  { %1032 = vmatprep.subr.mxu1 %v1103_v1  ;;  %990 = vmatpush3.msra.mxu0 %v216_v49 }
  0xdf   :  { %1033 = vmatpush3.msra.mxu1 %v1224_v55  ;;  %991 = vmatprep.subr.mxu0 %v1103_v1 }
  0xe0   :  { %1034 = vmatprep.subr.mxu1 %v1103_v1  ;;  %992 = vmatpush3.msra.mxu0 %v223_v59 }
  0xe1   :  { %1035 = vmatpush3.msra.mxu1 %v1236_v61  ;;  %993 = vmatprep.subr.mxu0 %v1103_v1 }
  0xe2   :  { %1036 = vmatprep.subr.mxu1 %v1103_v1  ;;  %994 = vmatpush3.msra.mxu0 %v230_v2 }
  0xe3   :  { %1037 = vmatpush3.msra.mxu1 %v1248_v4  ;;  %995 = vmatprep.subr.mxu0 %v1103_v1 }
  0xe4   :  { %1038 = vmatprep.subr.mxu1 %v1103_v1  ;;  %996 = vmatpush3.msra.mxu0 %v237_v12 }
  0xe5   :  { %1039 = vmatpush3.msra.mxu1 %v1260_v18  ;;  %997 = vmatprep.subr.mxu0 %v1103_v1 }
  0xe6   :  { %1040 = vmatprep.subr.mxu1 %v1103_v1  ;;  %998 = vmatpush3.msra.mxu0 %v244_v33 }
  0xe7   :  { %1041 = vmatpush3.msra.mxu1 %v1272_v37  ;;  %1042 = vmatprep.mubr.msk.f32.mxu1 %vm1104_vm0, %v1103_v1 }
  0xe8   :  { %999 = vmatprep.subr.mxu0 %v1103_v1  ;;  %1043 = vmatmul.mubr.f32.vlgmr.msra.gmra.mxu1 %v1336_v0 }
  0xe9   :  { %1000 = vmatpush3.msra.mxu0 %v251_v40  ;;  %1007 = vmatprep.mubr.msk.f32.mxu0 %vm1104_vm0, %v1103_v1 }
  0xea   :  { %1001 = vmatprep.subr.mxu0 %v1103_v1 }
  0xeb   :  { %1002 = vmatpush3.msra.mxu0 %v258_v45 }
  0xec   :  { %1003 = vmatprep.subr.mxu0 %v1103_v1 }
  0xed   :  { %1004 = vmatpush3.msra.mxu0 %v265_v56 }
  0xee   :  { %1005 = vmatprep.subr.mxu0 %v1103_v1 }
  0xef   :  { %1006 = vmatpush3.msra.mxu0 %v272_v62 }
  0xf0   :  { %1008 = vmatmul.mubr.f32.vlgmr.msra.gmra.mxu0 %v1336_v0 }
 0x166   :  { %v311_v5 = vpop.f32.mrf.mxu1 }
 0x168   :  { %v904_v6 = vpop.f32.mrf.mxu1 }
 0x16e   :  { %v160_v9 = vpop.f32.mrf.mxu0 }
 0x16f   :  { %v161_v20 = vadd.f32 %v732_v19, %v160_v9 }
 0x170   :  { %v869_v10 = vpop.f32.mrf.mxu0 }
 0x171   :  { %v312_v1 = vadd.f32 %v311_v5, %v161_v20 }
 0x186   :  { %v504_v13 = vpop.f32.mrf.mxu1 }
 0x188   :  { %v974_v14 = vpop.f32.mrf.mxu1 }
 0x18f   :  { %v415_v15 = vpop.f32.mrf.mxu0 }
 0x190   :  { %v416_v23 = vadd.f32 %v415_v15, %v312_v1 }
 0x191   :  { %v939_v16 = vpop.f32.mrf.mxu0 }
 0x192   :  { %v505_v24 = vadd.f32 %v504_v13, %v416_v23 }
 0x1a8   :  { %v710_v21 = vpop.f32.mrf.mxu1 }
 0x1aa   :  { %v1044_v22 = vpop.f32.mrf.mxu1 }
 0x1b0   :  { %v623_v25 = vpop.f32.mrf.mxu0 }
 0x1b1   :  { %v624_v26 = vadd.f32 %v623_v25, %v505_v24 }
 0x1b2   :  { %v1009_v27 = vpop.f32.mrf.mxu0 }
 0x1b3   :  { %v711_v28 = vadd.f32 %v710_v21, %v624_v26 }
 0x1b5   :  { %714 = vst [vmem:[#allocation5] sm:$0xff] %v711_v28 }
 0x1b6   :  { %1086 = shalt.err (!%p1083_p9)
}
 0x1b7   :  { %724 = dma.vmem_to_hbm [thread:$0]  %s722_s26, 128, %s1506_s3, [#allocation4]  }
 0x1b8   :  { %1097 = dma.done.wait [#allocation4], 128  }
 0x1b9   :  { %1098 = vsyncadd [#allocation4], 4294967168 }
 0x1ba   :  { %728 = vsyncpa [#allocation3], 1 }
 0x1bb   :  { %729 = vsyncpa [#allocation4], 1 }

// kernel: tpu_custom_call.1
= control target key start
LH: loop header
LB: loop body
LE: loop exit
PB: predicated region body
PF: predicated region fallthrough
CT: control target
= control target key end

     0   :  { %8 = vsyncpa [#allocation3], 0  ;;  %s1503_s0 = inlined_call_operand.vmem [shape: f32[8,1], index: 0, kind: input, shape index: {}]   ;;  %s1504_s1 = inlined_call_operand.vmem [shape: f32[3,128], index: 1, kind: input, shape index: {}]   ;;  %s1505_s2 = inlined_call_operand.hbm [shape: f32[128,128], index: 2, kind: input, shape index: {}]   ;;  %s1506_s3 = inlined_call_operand.hbm [shape: f32[8,128], index: 3, kind: output, shape index: {}]  }
   0x1   :  { %9 = vsyncpa [#allocation4], 0  ;;  %s1099_s12 = smov [#allocation2]  }
   0x2   :  { %s19_s13 = sshll.u32 %s1099_s12, 4  ;;  %s20_s13 = int_to_ptr.vmem [resolvable:$true] %s19_s13 }
   0x3   :  { %s1063_s14 = scalar_lea.vmem %s20_s13, 2048  ;;  %p1068_p1 = scmp.lt.s32.totalorder %s20_s13, %s20_s13 }
   0x4   :  { %p1064_p0 = scmp.ne.s32.totalorder %s20_s13, %s1063_s14  ;;  %p1069_p2 = scmp.lt.s32.totalorder %s1063_s14, %s1063_s14 }
   0x6   :  { %p1070_p3 = por %p1069_p2, %p1068_p1 }
   0x8   :  { %p1071_p4 = pnand %p1070_p3, %p1064_p0 }
   0xa   :  { %1074 = shalt.err (!%p1071_p4)
}
   0xb   :  { %s1100_s15 = smov 128   ;;  %s1101_s16 = smov 8  }
   0xc   :  { %25 = dma.hbm_to_vmem [thread:$0]  %s1505_s2, 2048, %s20_s13, [#allocation3], %s1100_s15, %s1100_s15, %s1101_s16  }
   0xd   :  { %1095 = dma.done.wait [#allocation3], 2048  }
   0xe   :  { %1096 = vsyncadd [#allocation3], 4294965248  ;;  %v1102_v0 = vmov 0   ;;  %v1103_v1 = vmov 0.0   ;;  %v29_v2 = vld [vmem:[%s1503_s0] sm:$0xff]  ;;  %v68_v3 = vld [vmem:[#allocation2 + $0x78] sm:$0xff] }
   0xf   :  { %1052 = vset.pattern.permute.xlu0 %v1102_v0  ;;  %870 = vmatprep.subr.mxu1 %v1103_v1  ;;  %v67_v4 = vld [vmem:[#allocation2 + $0x70] sm:$0xff]  ;;  %v1134_v5 = vand.u32 4294901760, %v68_v3  ;;  %v66_v7 = vld [vmem:[#allocation2 + $0x68] sm:$0xff]  ;;  %v65_v8 = vld [vmem:[#allocation2 + $0x60] sm:$0xff]  ;;  %vm1104_vm0 = vmmov 0   ;;  %s1105_s25 = smov [#allocation5]  }
  0x10   :  { %835 = vmatprep.subr.mxu0 %v1103_v1  ;;  %35 = vperm.xlu0 %1052, %v29_v2   ;;  %v1136_v6 = vand.u32 4294901760, %v67_v4  ;;  %v1138_v9 = vand.u32 4294901760, %v66_v7  ;;  %v1140_v10 = vand.u32 4294901760, %v65_v8  ;;  %v64_v11 = vld [vmem:[#allocation2 + $0x58] sm:$0xff]  ;;  %v63_v12 = vld [vmem:[#allocation2 + $0x50] sm:$0xff]  ;;  %v62_v17 = vld [vmem:[#allocation2 + $0x48] sm:$0xff] }
  0x11   :  { %v1143_v13 = vsub.f32 %v68_v3, %v1134_v5  ;;  %836 = vmatpush3.msra.mxu0 %v1134_v5  ;;  %v1149_v15 = vand.u32 4294901760, %v64_v11  ;;  %v1151_v16 = vand.u32 4294901760, %v63_v12  ;;  %v61_v18 = vld [vmem:[#allocation2 + $0x40] sm:$0xff]  ;;  %v1160_v21 = vand.u32 4294901760, %v62_v17  ;;  %v60_v36 = vld [vmem:[#allocation2 + $0x38] sm:$0xff]  ;;  %v59_v37 = vld [vmem:[#allocation2 + $0x30] sm:$0xff]  ;;  %902 = vmatprep.mubr.msk.f32.mxu1 %vm1104_vm0, %v1103_v1 }
  0x12   :  { %v1146_v14 = vsub.f32 %v67_v4, %v1136_v6  ;;  %v1154_v19 = vsub.f32 %v66_v7, %v1138_v9  ;;  %v1157_v20 = vsub.f32 %v65_v8, %v1140_v10  ;;  %837 = vmatprep.subr.mxu0 %v1103_v1  ;;  %v1162_v22 = vand.u32 4294901760, %v61_v18  ;;  %v58_v41 = vld [vmem:[#allocation2 + $0x28] sm:$0xff]  ;;  %v57_v43 = vld [vmem:[#allocation2 + $0x20] sm:$0xff]  ;;  %v56_v51 = vld [vmem:[#allocation2 + $0x18] sm:$0xff]  ;;  %867 = vmatprep.mubr.msk.f32.mxu0 %vm1104_vm0, %v1103_v1  ;;  %s721_s26 = sshll.u32 %s1105_s25, 4  ;;  %s722_s26 = int_to_ptr.vmem [resolvable:$true] %s721_s26 }
  0x13   :  { %v167_v23 = vand.u32 4294901760, %v1143_v13  ;;  %v1167_v25 = vsub.f32 %v64_v11, %v1149_v15  ;;  %838 = vmatpush3.msra.mxu0 %v1136_v6  ;;  %v1171_v26 = vsub.f32 %v63_v12, %v1151_v16  ;;  %v1177_v29 = vsub.f32 %v62_v17, %v1160_v21  ;;  %v55_v57 = vld [vmem:[#allocation2 + $0x10] sm:$0xff]  ;;  %v54_v63 = vld [vmem:[#allocation2 + $0x8] sm:$0xff]  ;;  %v53_v8 = vld [vmem:[#allocation2] sm:$0xff]  ;;  %s1075_s27 = scalar_lea.vmem %s722_s26, 128  ;;  %p1080_p6 = scmp.lt.s32.totalorder %s722_s26, %s722_s26 }
  0x14   :  { %v174_v24 = vand.u32 4294901760, %v1146_v14  ;;  %v181_v27 = vand.u32 4294901760, %v1154_v19  ;;  %v188_v28 = vand.u32 4294901760, %v1157_v20  ;;  %839 = vmatprep.subr.mxu0 %v1103_v1  ;;  %v1193_v35 = vsub.f32 %v61_v18, %v1162_v22  ;;  %p1076_p5 = scmp.ne.s32.totalorder %s722_s26, %s1075_s27  ;;  %p1081_p7 = scmp.lt.s32.totalorder %s1075_s27, %s1075_s27 }
  0x15   :  { %v168_v30 = vsub.f32 %v1143_v13, %v167_v23  ;;  %v195_v32 = vand.u32 4294901760, %v1167_v25  ;;  %840 = vmatpush3.msra.mxu0 %v1138_v9  ;;  %v202_v34 = vand.u32 4294901760, %v1171_v26  ;;  %v209_v42 = vand.u32 4294901760, %v1177_v29 }
  0x16   :  { %v175_v31 = vsub.f32 %v1146_v14, %v174_v24  ;;  %v182_v33 = vsub.f32 %v1154_v19, %v181_v27  ;;  %841 = vmatprep.subr.mxu0 %v1103_v1  ;;  %v189_v40 = vsub.f32 %v1157_v20, %v188_v28  ;;  %v1205_v46 = vand.u32 4294901760, %v60_v36  ;;  %p1082_p8 = por %p1081_p7, %p1080_p6 }
  0x17   :  { %v169_v38 = vand.u32 4294901760, %v168_v30  ;;  %842 = vmatpush3.msra.mxu0 %v1140_v10  ;;  %v196_v45 = vsub.f32 %v1167_v25, %v195_v32  ;;  %v1207_v47 = vand.u32 4294901760, %v59_v37  ;;  %v203_v48 = vsub.f32 %v1171_v26, %v202_v34 }
  0x18   :  { %v176_v39 = vand.u32 4294901760, %v175_v31  ;;  %843 = vmatprep.subr.mxu0 %v1103_v1  ;;  %v183_v44 = vand.u32 4294901760, %v182_v33  ;;  %v216_v49 = vand.u32 4294901760, %v1193_v35  ;;  %v1215_v50 = vand.u32 4294901760, %v58_v41  ;;  %p1083_p9 = pnand %p1082_p8, %p1076_p5 }
  0x19   :  { %871 = vmatpush3.msra.mxu1 %v169_v38  ;;  %844 = vmatpush3.msra.mxu0 %v1149_v15  ;;  %v190_v52 = vand.u32 4294901760, %v189_v40  ;;  %v1218_v53 = vsub.f32 %v60_v36, %v1205_v46  ;;  %v1222_v54 = vsub.f32 %v59_v37, %v1207_v47  ;;  %v1224_v55 = vand.u32 4294901760, %v57_v43 }
  0x1a   :  { %872 = vmatprep.subr.mxu1 %v1103_v1  ;;  %845 = vmatprep.subr.mxu0 %v1103_v1  ;;  %v210_v56 = vsub.f32 %v1177_v29, %v209_v42  ;;  %v197_v58 = vand.u32 4294901760, %v196_v45  ;;  %v1234_v60 = vsub.f32 %v58_v41, %v1215_v50  ;;  %v1236_v61 = vand.u32 4294901760, %v56_v51 }
  0x1b   :  { %873 = vmatpush3.msra.mxu1 %v176_v39  ;;  %846 = vmatpush3.msra.mxu0 %v1151_v16  ;;  %v223_v59 = vand.u32 4294901760, %v1218_v53  ;;  %v217_v62 = vsub.f32 %v1193_v35, %v216_v49  ;;  %v204_v0 = vand.u32 4294901760, %v203_v48  ;;  %v230_v2 = vand.u32 4294901760, %v1222_v54 }
  0x1c   :  { %874 = vmatprep.subr.mxu1 %v1103_v1  ;;  %847 = vmatprep.subr.mxu0 %v1103_v1  ;;  %v1246_v3 = vsub.f32 %v57_v43, %v1224_v55  ;;  %v1248_v4 = vand.u32 4294901760, %v55_v57  ;;  %v211_v7 = vand.u32 4294901760, %v210_v56  ;;  %v237_v12 = vand.u32 4294901760, %v1234_v60 }
  0x1d   :  { %875 = vmatpush3.msra.mxu1 %v183_v44  ;;  %848 = vmatpush3.msra.mxu0 %v1160_v21  ;;  %v224_v11 = vsub.f32 %v1218_v53, %v223_v59  ;;  %v1258_v17 = vsub.f32 %v56_v51, %v1236_v61  ;;  %v1260_v18 = vand.u32 4294901760, %v54_v63  ;;  %v218_v30 = vand.u32 4294901760, %v217_v62 }
  0x1e   :  { %876 = vmatprep.subr.mxu1 %v1103_v1  ;;  %849 = vmatprep.subr.mxu0 %v1103_v1  ;;  %v231_v31 = vsub.f32 %v1222_v54, %v230_v2  ;;  %v244_v33 = vand.u32 4294901760, %v1246_v3  ;;  %v1270_v36 = vsub.f32 %v55_v57, %v1248_v4  ;;  %v1272_v37 = vand.u32 4294901760, %v53_v8 }
  0x1f   :  { %877 = vmatpush3.msra.mxu1 %v190_v52  ;;  %850 = vmatpush3.msra.mxu0 %v1162_v22  ;;  %v225_v38 = vand.u32 4294901760, %v224_v11  ;;  %v238_v39 = vsub.f32 %v1234_v60, %v237_v12  ;;  %v251_v40 = vand.u32 4294901760, %v1258_v17  ;;  %v1282_v41 = vsub.f32 %v54_v63, %v1260_v18 }
  0x20   :  { %878 = vmatprep.subr.mxu1 %v1103_v1  ;;  %851 = vmatprep.subr.mxu0 %v1103_v1  ;;  %v232_v43 = vand.u32 4294901760, %v231_v31  ;;  %v245_v44 = vsub.f32 %v1246_v3, %v244_v33  ;;  %v258_v45 = vand.u32 4294901760, %v1270_v36  ;;  %v1292_v48 = vsub.f32 %v53_v8, %v1272_v37  ;;  %v730_v31 = vld [vmem:[%s1504_s1] ss:$0 sm:$0xff] }
  0x21   :  { %879 = vmatpush3.msra.mxu1 %v197_v58  ;;  %852 = vmatpush3.msra.mxu0 %v1205_v46  ;;  %v239_v51 = vand.u32 4294901760, %v238_v39  ;;  %v252_v52 = vsub.f32 %v1258_v17, %v251_v40  ;;  %v265_v56 = vand.u32 4294901760, %v1282_v41 }
  0x22   :  { %880 = vmatprep.subr.mxu1 %v1103_v1  ;;  %853 = vmatprep.subr.mxu0 %v1103_v1  ;;  %v246_v57 = vand.u32 4294901760, %v245_v44  ;;  %v259_v58 = vsub.f32 %v1270_v36, %v258_v45  ;;  %v272_v62 = vand.u32 4294901760, %v1292_v48 }
  0x23   :  { %881 = vmatpush3.msra.mxu1 %v204_v0  ;;  %854 = vmatpush3.msra.mxu0 %v1207_v47  ;;  %v253_v63 = vand.u32 4294901760, %v252_v52  ;;  %v266_v0 = vsub.f32 %v1282_v41, %v265_v56 }
  0x24   :  { %882 = vmatprep.subr.mxu1 %v1103_v1  ;;  %855 = vmatprep.subr.mxu0 %v1103_v1  ;;  %v273_v8 = vsub.f32 %v1292_v48, %v272_v62 }
  0x25   :  { %883 = vmatpush3.msra.mxu1 %v211_v7  ;;  %856 = vmatpush3.msra.mxu0 %v1215_v50  ;;  %v260_v7 = vand.u32 4294901760, %v259_v58  ;;  %v267_v11 = vand.u32 4294901760, %v266_v0 }
  0x26   :  { %884 = vmatprep.subr.mxu1 %v1103_v1  ;;  %857 = vmatprep.subr.mxu0 %v1103_v1 }
  0x27   :  { %885 = vmatpush3.msra.mxu1 %v218_v30  ;;  %858 = vmatpush3.msra.mxu0 %v1224_v55  ;;  %v274_v30 = vand.u32 4294901760, %v273_v8 }
  0x28   :  { %886 = vmatprep.subr.mxu1 %v1103_v1  ;;  %859 = vmatprep.subr.mxu0 %v1103_v1 }
  0x29   :  { %887 = vmatpush3.msra.mxu1 %v225_v38  ;;  %860 = vmatpush3.msra.mxu0 %v1236_v61  ;;  %v731_v38 = vld [vmem:[%s1504_s1 + $0x1] ss:$0 sm:$0xff] }
  0x2a   :  { %888 = vmatprep.subr.mxu1 %v1103_v1  ;;  %861 = vmatprep.subr.mxu0 %v1103_v1 }
  0x2b   :  { %889 = vmatpush3.msra.mxu1 %v232_v43  ;;  %862 = vmatpush3.msra.mxu0 %v1248_v4 }
  0x2c   :  { %890 = vmatprep.subr.mxu1 %v1103_v1  ;;  %863 = vmatprep.subr.mxu0 %v1103_v1 }
  0x2d   :  { %891 = vmatpush3.msra.mxu1 %v239_v51  ;;  %864 = vmatpush3.msra.mxu0 %v1260_v18 }
  0x2e   :  { %892 = vmatprep.subr.mxu1 %v1103_v1  ;;  %865 = vmatprep.subr.mxu0 %v1103_v1 }
  0x2f   :  { %893 = vmatpush3.msra.mxu1 %v246_v57  ;;  %866 = vmatpush3.msra.mxu0 %v1272_v37 }
  0x30   :  { %894 = vmatprep.subr.mxu1 %v1103_v1  ;;  %905 = vmatprep.subr.mxu0 %v1103_v1 }
  0x31   :  { %895 = vmatpush3.msra.mxu1 %v253_v63 }
  0x32   :  { %896 = vmatprep.subr.mxu1 %v1103_v1 }
  0x33   :  { %897 = vmatpush3.msra.mxu1 %v260_v7 }
  0x34   :  { %898 = vmatprep.subr.mxu1 %v1103_v1 }
  0x35   :  { %899 = vmatpush3.msra.mxu1 %v267_v11 }
  0x36   :  { %900 = vmatprep.subr.mxu1 %v1103_v1 }
  0x37   :  { %901 = vmatpush3.msra.mxu1 %v274_v30 }
  0x38   :  { %940 = vmatprep.subr.mxu1 %v1103_v1 }
  0x8b   :  { %v36_v39 = vpop.permute.xlu0 %35 }
  0x8c   :  { %v42_v43 = vmul.f32 %v730_v31, %v36_v39 }
  0x8e   :  { %v47_v44 = vadd.f32 %v731_v38, %v42_v43 }
  0x90   :  { %v49_v51 = vmul.f32 0.70710677, %v47_v44  ;;  %v48_v57 = vmul.f32 0.5, %v47_v44 }
  0x92   :  { %1053 = verf.f32 %v49_v51 }
  0x9f   :  { %v1054_v52 = vpop.eup %1053 }
  0xa0   :  { %v51_v58 = vadd.f32 1.0, %v1054_v52 }
  0xa2   :  { %v52_v63 = vmul.f32 %v51_v58, %v48_v57 }
  0xa4   :  { %v1336_v0 = vand.u32 4294901760, %v52_v63 }
  0xa6   :  { %903 = vmatmul.mubr.f32.vlgmr.msra.gmra.mxu1 %v1336_v0  ;;  %v1340_v7 = vsub.f32 %v52_v63, %v1336_v0 }
  0xa7   :  { %941 = vmatpush3.msra.mxu1 %v1134_v5  ;;  %972 = vmatprep.mubr.msk.f32.mxu1 %vm1104_vm0, %v1103_v1 }
  0xa8   :  { %942 = vmatprep.subr.mxu1 %v1103_v1  ;;  %v156_v8 = vand.u32 4294901760, %v1340_v7 }
  0xa9   :  { %943 = vmatpush3.msra.mxu1 %v1136_v6 }
  0xaa   :  { %944 = vmatprep.subr.mxu1 %v1103_v1  ;;  %v157_v11 = vsub.f32 %v1340_v7, %v156_v8 }
  0xab   :  { %945 = vmatpush3.msra.mxu1 %v1138_v9 }
  0xac   :  { %946 = vmatprep.subr.mxu1 %v1103_v1  ;;  %v158_v30 = vand.u32 4294901760, %v157_v11 }
  0xad   :  { %947 = vmatpush3.msra.mxu1 %v1140_v10 }
  0xae   :  { %948 = vmatprep.subr.mxu1 %v1103_v1  ;;  %868 = vmatmul.mubr.f32.vlgmr.msra.gmra.mxu0 %v158_v30 }
  0xaf   :  { %906 = vmatpush3.msra.mxu0 %v1143_v13  ;;  %949 = vmatpush3.msra.mxu1 %v1149_v15 }
  0xb0   :  { %907 = vmatprep.subr.mxu0 %v1103_v1  ;;  %950 = vmatprep.subr.mxu1 %v1103_v1 }
  0xb1   :  { %908 = vmatpush3.msra.mxu0 %v1146_v14  ;;  %951 = vmatpush3.msra.mxu1 %v1151_v16 }
  0xb2   :  { %909 = vmatprep.subr.mxu0 %v1103_v1  ;;  %952 = vmatprep.subr.mxu1 %v1103_v1 }
  0xb3   :  { %910 = vmatpush3.msra.mxu0 %v1154_v19  ;;  %953 = vmatpush3.msra.mxu1 %v1160_v21  ;;  %v732_v19 = vld [vmem:[%s1504_s1 + $0x2] ss:$0 sm:$0xff] }
  0xb4   :  { %911 = vmatprep.subr.mxu0 %v1103_v1  ;;  %954 = vmatprep.subr.mxu1 %v1103_v1 }
  0xb5   :  { %912 = vmatpush3.msra.mxu0 %v1157_v20  ;;  %955 = vmatpush3.msra.mxu1 %v1162_v22 }
  0xb6   :  { %913 = vmatprep.subr.mxu0 %v1103_v1  ;;  %956 = vmatprep.subr.mxu1 %v1103_v1 }
  0xb7   :  { %914 = vmatpush3.msra.mxu0 %v1167_v25  ;;  %957 = vmatpush3.msra.mxu1 %v1205_v46 }
  0xb8   :  { %915 = vmatprep.subr.mxu0 %v1103_v1  ;;  %958 = vmatprep.subr.mxu1 %v1103_v1 }
  0xb9   :  { %916 = vmatpush3.msra.mxu0 %v1171_v26  ;;  %959 = vmatpush3.msra.mxu1 %v1207_v47 }
  0xba   :  { %917 = vmatprep.subr.mxu0 %v1103_v1  ;;  %960 = vmatprep.subr.mxu1 %v1103_v1 }
  0xbb   :  { %918 = vmatpush3.msra.mxu0 %v1177_v29  ;;  %961 = vmatpush3.msra.mxu1 %v1215_v50 }
  0xbc   :  { %919 = vmatprep.subr.mxu0 %v1103_v1  ;;  %962 = vmatprep.subr.mxu1 %v1103_v1 }
  0xbd   :  { %920 = vmatpush3.msra.mxu0 %v1193_v35  ;;  %963 = vmatpush3.msra.mxu1 %v1224_v55 }
  0xbe   :  { %921 = vmatprep.subr.mxu0 %v1103_v1  ;;  %964 = vmatprep.subr.mxu1 %v1103_v1 }
  0xbf   :  { %922 = vmatpush3.msra.mxu0 %v1218_v53  ;;  %965 = vmatpush3.msra.mxu1 %v1236_v61 }
  0xc0   :  { %923 = vmatprep.subr.mxu0 %v1103_v1  ;;  %966 = vmatprep.subr.mxu1 %v1103_v1 }
  0xc1   :  { %924 = vmatpush3.msra.mxu0 %v1222_v54  ;;  %967 = vmatpush3.msra.mxu1 %v1248_v4 }
  0xc2   :  { %925 = vmatprep.subr.mxu0 %v1103_v1  ;;  %968 = vmatprep.subr.mxu1 %v1103_v1 }
  0xc3   :  { %926 = vmatpush3.msra.mxu0 %v1234_v60  ;;  %969 = vmatpush3.msra.mxu1 %v1260_v18 }
  0xc4   :  { %927 = vmatprep.subr.mxu0 %v1103_v1  ;;  %970 = vmatprep.subr.mxu1 %v1103_v1 }
  0xc5   :  { %928 = vmatpush3.msra.mxu0 %v1246_v3  ;;  %971 = vmatpush3.msra.mxu1 %v1272_v37 }
  0xc6   :  { %929 = vmatprep.subr.mxu0 %v1103_v1  ;;  %973 = vmatmul.mubr.f32.vlgmr.msra.gmra.mxu1 %v156_v8 }
  0xc7   :  { %1010 = vmatprep.subr.mxu1 %v1103_v1  ;;  %930 = vmatpush3.msra.mxu0 %v1258_v17 }
  0xc8   :  { %1011 = vmatpush3.msra.mxu1 %v1134_v5  ;;  %931 = vmatprep.subr.mxu0 %v1103_v1 }
  0xc9   :  { %1012 = vmatprep.subr.mxu1 %v1103_v1  ;;  %932 = vmatpush3.msra.mxu0 %v1270_v36 }
  0xca   :  { %1013 = vmatpush3.msra.mxu1 %v1136_v6  ;;  %933 = vmatprep.subr.mxu0 %v1103_v1 }
  0xcb   :  { %1014 = vmatprep.subr.mxu1 %v1103_v1  ;;  %934 = vmatpush3.msra.mxu0 %v1282_v41 }
  0xcc   :  { %1015 = vmatpush3.msra.mxu1 %v1138_v9  ;;  %935 = vmatprep.subr.mxu0 %v1103_v1 }
  0xcd   :  { %1016 = vmatprep.subr.mxu1 %v1103_v1  ;;  %936 = vmatpush3.msra.mxu0 %v1292_v48 }
  0xce   :  { %937 = vmatprep.mubr.msk.f32.mxu0 %vm1104_vm0, %v1103_v1  ;;  %1017 = vmatpush3.msra.mxu1 %v1140_v10 }
  0xcf   :  { %938 = vmatmul.mubr.f32.vlgmr.msra.gmra.mxu0 %v1340_v7  ;;  %975 = vmatprep.subr.mxu0 %v1103_v1 }
  0xd0   :  { %1018 = vmatprep.subr.mxu1 %v1103_v1  ;;  %976 = vmatpush3.msra.mxu0 %v167_v23 }
  0xd1   :  { %1019 = vmatpush3.msra.mxu1 %v1149_v15  ;;  %977 = vmatprep.subr.mxu0 %v1103_v1 }
  0xd2   :  { %1020 = vmatprep.subr.mxu1 %v1103_v1  ;;  %978 = vmatpush3.msra.mxu0 %v174_v24 }
  0xd3   :  { %1021 = vmatpush3.msra.mxu1 %v1151_v16  ;;  %979 = vmatprep.subr.mxu0 %v1103_v1 }
  0xd4   :  { %1022 = vmatprep.subr.mxu1 %v1103_v1  ;;  %980 = vmatpush3.msra.mxu0 %v181_v27 }
  0xd5   :  { %1023 = vmatpush3.msra.mxu1 %v1160_v21  ;;  %981 = vmatprep.subr.mxu0 %v1103_v1 }
  0xd6   :  { %1024 = vmatprep.subr.mxu1 %v1103_v1  ;;  %982 = vmatpush3.msra.mxu0 %v188_v28 }
  0xd7   :  { %1025 = vmatpush3.msra.mxu1 %v1162_v22  ;;  %983 = vmatprep.subr.mxu0 %v1103_v1 }
  0xd8   :  { %1026 = vmatprep.subr.mxu1 %v1103_v1  ;;  %984 = vmatpush3.msra.mxu0 %v195_v32 }
  0xd9   :  { %1027 = vmatpush3.msra.mxu1 %v1205_v46  ;;  %985 = vmatprep.subr.mxu0 %v1103_v1 }
  0xda   :  { %1028 = vmatprep.subr.mxu1 %v1103_v1  ;;  %986 = vmatpush3.msra.mxu0 %v202_v34 }
  0xdb   :  { %1029 = vmatpush3.msra.mxu1 %v1207_v47  ;;  %987 = vmatprep.subr.mxu0 %v1103_v1 }
  0xdc   :  { %1030 = vmatprep.subr.mxu1 %v1103_v1  ;;  %988 = vmatpush3.msra.mxu0 %v209_v42 }
  0xdd   :  { %1031 = vmatpush3.msra.mxu1 %v1215_v50  ;;  %989 = vmatprep.subr.mxu0 %v1103_v1 }
  0xde   :  { %1032 = vmatprep.subr.mxu1 %v1103_v1  ;;  %990 = vmatpush3.msra.mxu0 %v216_v49 }
  0xdf   :  { %1033 = vmatpush3.msra.mxu1 %v1224_v55  ;;  %991 = vmatprep.subr.mxu0 %v1103_v1 }
  0xe0   :  { %1034 = vmatprep.subr.mxu1 %v1103_v1  ;;  %992 = vmatpush3.msra.mxu0 %v223_v59 }
  0xe1   :  { %1035 = vmatpush3.msra.mxu1 %v1236_v61  ;;  %993 = vmatprep.subr.mxu0 %v1103_v1 }
  0xe2   :  { %1036 = vmatprep.subr.mxu1 %v1103_v1  ;;  %994 = vmatpush3.msra.mxu0 %v230_v2 }
  0xe3   :  { %1037 = vmatpush3.msra.mxu1 %v1248_v4  ;;  %995 = vmatprep.subr.mxu0 %v1103_v1 }
  0xe4   :  { %1038 = vmatprep.subr.mxu1 %v1103_v1  ;;  %996 = vmatpush3.msra.mxu0 %v237_v12 }
  0xe5   :  { %1039 = vmatpush3.msra.mxu1 %v1260_v18  ;;  %997 = vmatprep.subr.mxu0 %v1103_v1 }
  0xe6   :  { %1040 = vmatprep.subr.mxu1 %v1103_v1  ;;  %998 = vmatpush3.msra.mxu0 %v244_v33 }
  0xe7   :  { %1041 = vmatpush3.msra.mxu1 %v1272_v37  ;;  %1042 = vmatprep.mubr.msk.f32.mxu1 %vm1104_vm0, %v1103_v1 }
  0xe8   :  { %999 = vmatprep.subr.mxu0 %v1103_v1  ;;  %1043 = vmatmul.mubr.f32.vlgmr.msra.gmra.mxu1 %v1336_v0 }
  0xe9   :  { %1000 = vmatpush3.msra.mxu0 %v251_v40  ;;  %1007 = vmatprep.mubr.msk.f32.mxu0 %vm1104_vm0, %v1103_v1 }
  0xea   :  { %1001 = vmatprep.subr.mxu0 %v1103_v1 }
  0xeb   :  { %1002 = vmatpush3.msra.mxu0 %v258_v45 }
  0xec   :  { %1003 = vmatprep.subr.mxu0 %v1103_v1 }
  0xed   :  { %1004 = vmatpush3.msra.mxu0 %v265_v56 }
  0xee   :  { %1005 = vmatprep.subr.mxu0 %v1103_v1 }
  0xef   :  { %1006 = vmatpush3.msra.mxu0 %v272_v62 }
  0xf0   :  { %1008 = vmatmul.mubr.f32.vlgmr.msra.gmra.mxu0 %v1336_v0 }
 0x166   :  { %v311_v5 = vpop.f32.mrf.mxu1 }
 0x168   :  { %v904_v6 = vpop.f32.mrf.mxu1 }
 0x16e   :  { %v160_v9 = vpop.f32.mrf.mxu0 }
 0x16f   :  { %v161_v20 = vadd.f32 %v732_v19, %v160_v9 }
 0x170   :  { %v869_v10 = vpop.f32.mrf.mxu0 }
 0x171   :  { %v312_v1 = vadd.f32 %v311_v5, %v161_v20 }
 0x186   :  { %v504_v13 = vpop.f32.mrf.mxu1 }
 0x188   :  { %v974_v14 = vpop.f32.mrf.mxu1 }
 0x18f   :  { %v415_v15 = vpop.f32.mrf.mxu0 }
 0x190   :  { %v416_v23 = vadd.f32 %v415_v15, %v312_v1 }
 0x191   :  { %v939_v16 = vpop.f32.mrf.mxu0 }
 0x192   :  { %v505_v24 = vadd.f32 %v504_v13, %v416_v23 }
 0x1a8   :  { %v710_v21 = vpop.f32.mrf.mxu1 }
 0x1aa   :  { %v1044_v22 = vpop.f32.mrf.mxu1 }
 0x1b0   :  { %v623_v25 = vpop.f32.mrf.mxu0 }
 0x1b1   :  { %v624_v26 = vadd.f32 %v623_v25, %v505_v24 }
 0x1b2   :  { %v1009_v27 = vpop.f32.mrf.mxu0 }
 0x1b3   :  { %v711_v28 = vadd.f32 %v710_v21, %v624_v26 }
 0x1b5   :  { %714 = vst [vmem:[#allocation5] sm:$0xff] %v711_v28 }
 0x1b6   :  { %1086 = shalt.err (!%p1083_p9)
}
 0x1b7   :  { %724 = dma.vmem_to_hbm [thread:$0]  %s722_s26, 128, %s1506_s3, [#allocation4]  }
 0x1b8   :  { %1097 = dma.done.wait [#allocation4], 128  }
 0x1b9   :  { %1098 = vsyncadd [#allocation4], 4294967168 }
 0x1ba   :  { %728 = vsyncpa [#allocation3], 1 }
 0x1bb   :  { %729 = vsyncpa [#allocation4], 1 }

</bundles_post_ra>
